<compile_context>
chip_gen: v7x
topology: tpu7x:2x2x1
jax: 0.10.0
libtpu: 0.0.40
codegen_flags: <defaults>
</compile_context>

<pallas_src>
import functools

import jax
import jax.numpy as jnp
import numpy as np
from jax import lax
from jax.experimental import pallas as pl
from jax.experimental.pallas import tpu as pltpu


# ----------------------------- Pallas kernel -------------------------------

def _mesformer_kernel(q_ref, p_ref, g_ref, w_ref, o_ref, *, eps):
    nb, S, Ep = q_ref.shape
    q = q_ref[...].astype(jnp.float32)                 # (nb, S, Ep)

    pool_c = p_ref[0:1, :]                             # (1, Ep)  beta @ (P - I)
    sq_b = p_ref[1:2, :]                               # (1, Ep)  SQ linear bias

    # --- LayerNormChannel: normalize over the sequence axis (dim 1) ---------
    u = jnp.mean(q, axis=1, keepdims=True)             # (nb, 1, Ep)
    d = q - u
    s = jnp.mean(d * d, axis=1, keepdims=True)         # biased variance
    xn = d * lax.rsqrt(s + eps)                        # rsqrt -> EUP slot

    # Flatten tokens: everything below is per-token.  (nb,S,Ep) -> (nb*S,Ep) is
    # a leading-dim collapse with an aligned (8,128) minor tile -> free.
    q2 = q.reshape(nb * S, Ep)
    xn2 = xn.reshape(nb * S, Ep)

    # --- token mixer: affine + (avg-pool over channels minus identity), fused
    #     into a single precomputed (Ep, Ep) matrix -> one MXU matmul.
    pooled = jnp.dot(xn2, g_ref[...],
                     preferred_element_type=jnp.float32) + pool_c

    # --- residual (dropout == identity at eval) ------------------------------
    x1 = q2 + pooled                                   # padded lanes are exactly 0

    # --- SQLayer1d: x * sigmoid(Linear(x)) -----------------------------------
    y = jax.nn.sigmoid(
        jnp.dot(x1, w_ref[...], preferred_element_type=jnp.float32) + sq_b)
    o_ref[...] = (x1 * y).reshape(nb, S, Ep).astype(o_ref.dtype)


# ------------------------------- wrapper ------------------------------------

def _pool_matrix_np(E, pool_size=3):
    """(E, E) matrix P with (x @ P)[..., i] == AvgPool1d(k, s=1, p=k//2,
    count_include_pad=False)(x)[..., i]."""
    half = pool_size // 2
    P = np.zeros((E, E), dtype=np.float32)
    for i in range(E):
        lo, hi = max(0, i - half), min(E, i + half + 1)
        cnt = float(hi - lo)
        for j in range(lo, hi):
            P[j, i] = 1.0 / cnt
    return P


def mesformer_block(value, key, query, params, *, eps=1e-5, batch_tile=None):
    # pool_att path: only `query` is consumed (matches the PyTorch forward).
    del value, key
    N, S, E = query.shape
    Ep = ((E + 127) // 128) * 128                      # lane-dense channel dim
    nb = N if batch_tile is None else min(batch_tile, N)
    Np = ((N + nb - 1) // nb) * nb                     # batch padded to tile

    q = query.astype(jnp.float32)
    if Ep != E or Np != N:
        q = jnp.pad(q, ((0, Np - N), (0, 0), (0, Ep - E)))

    gamma = params["ln_weight"].astype(jnp.float32)
    beta = params["ln_bias"].astype(jnp.float32)
    sq_w = params["sq_weight"].astype(jnp.float32)
    sq_b = params["sq_bias"].astype(jnp.float32)

    # Fold the per-channel affine into the (pool - identity) matrix:
    #   (gamma*xn + beta) @ (P - I) = xn @ (diag(gamma)(P - I)) + beta @ (P - I)
    M = jnp.asarray(_pool_matrix_np(E) - np.eye(E, dtype=np.float32))   # (E, E)
    G = jnp.zeros((Ep, Ep), jnp.float32).at[:E, :E].set(gamma[:, None] * M)
    c = beta @ M                                                        # (E,)

    # torch Linear: y = x @ W.T + b  -> pass W.T, zero-padded to (Ep, Ep).
    w_pad = jnp.zeros((Ep, Ep), jnp.float32).at[:E, :E].set(sq_w.T)

    # pooled-bias row and sq bias packed into one small constant block.
    pvec = jnp.zeros((2, Ep), jnp.float32)
    pvec = pvec.at[0, :E].set(c).at[1, :E].set(sq_b)

    grid_n = Np // nb
    kernel = functools.partial(_mesformer_kernel, eps=eps)
    out = pl.pallas_call(
        kernel,
        out_shape=jax.ShapeDtypeStruct((Np, S, Ep), query.dtype),
        grid_spec=pltpu.PrefetchScalarGridSpec(
            num_scalar_prefetch=0,
            grid=(grid_n,),
            in_specs=[
                pl.BlockSpec((nb, S, Ep), lambda i: (i, 0, 0)),  # query tile
                pl.BlockSpec((2, Ep), lambda i: (0, 0)),         # biases
                pl.BlockSpec((Ep, Ep), lambda i: (0, 0)),        # diag(gamma)(P-I)
                pl.BlockSpec((Ep, Ep), lambda i: (0, 0)),        # W^T (padded)
            ],
            out_specs=pl.BlockSpec((nb, S, Ep), lambda i: (i, 0, 0)),
        ),
        compiler_params=pltpu.CompilerParams(
            dimension_semantics=("parallel",)),
    )(q, pvec, G, w_pad)
    return out[:N, :, :E]


# ---------------------------- pure-JAX reference ----------------------------

def mesformer_ref(query, params, *, eps=1e-5):
    gamma, beta = params["ln_weight"], params["ln_bias"]
    W, b = params["sq_weight"], params["sq_bias"]
    E = query.shape[-1]
    u = jnp.mean(query, axis=1, keepdims=True)
    s = jnp.mean((query - u) ** 2, axis=1, keepdims=True)
    xn = (query - u) / jnp.sqrt(s + eps)
    xn = gamma[None, None, :] * xn + beta[None, None, :]
    P = jnp.asarray(_pool_matrix_np(E))
    pooled = jnp.einsum("nse,ef->nsf", xn, P) - xn
    x1 = query + pooled
    y = jax.nn.sigmoid(jnp.einsum("nse,fe->nsf", x1, W) + b[None, None, :])
    return x1 * y


# --------------------------------- main --------------------------------------

if __name__ == "__main__":
    jax.config.update("jax_default_matmul_precision", "highest")

    N, S, E = 2, 8, 32      # batch, seq, embed_size

    key0 = jax.random.PRNGKey(0)
    kq, kw, kb, kg, kbe = jax.random.split(key0, 5)

    query = jax.random.normal(kq, (N, S, E), dtype=jnp.float32)
    value = query
    key_t = query

    # Non-trivial parameters (module shapes):
    #   LayerNormChannel(embed_size): weight (E,), bias (E,)
    #   SQLayer1d: Linear(E, E) weight (E,E) + bias (E,)
    params = {
        "ln_weight": 1.0 + 0.1 * jax.random.normal(kg, (E,), jnp.float32),
        "ln_bias": 0.05 * jax.random.normal(kbe, (E,), jnp.float32),
        "sq_weight": jax.random.normal(kw, (E, E), jnp.float32)
                     * (1.0 / np.sqrt(E)),
        "sq_bias": jax.random.normal(kb, (E,), jnp.float32) * 0.01,
    }

    out = mesformer_block(value, key_t, query, params)
    out = jax.block_until_ready(out)

    ref = mesformer_ref(query, params)
    assert out.shape == (N, S, E)
    np.testing.assert_allclose(np.asarray(out), np.asarray(ref),
                               rtol=5e-4, atol=1e-5)
    print("KERNEL_OK")
</pallas_src>

<mosaic_0001>
module attributes {stable_mosaic.version = 11 : i64} {
  func.func @_mesformer_kernel(%arg0: i32, %arg1: memref<2x8x128xf32, #tpu.memory_space<vmem>>, %arg2: memref<2x128xf32, #tpu.memory_space<vmem>>, %arg3: memref<128x128xf32, #tpu.memory_space<vmem>>, %arg4: memref<128x128xf32, #tpu.memory_space<vmem>>, %arg5: memref<2x8x128xf32, #tpu.memory_space<vmem>>) attributes {dimension_semantics = [#tpu.dimension_semantics<parallel>], iteration_bounds = array<i64: 1>, scalar_prefetch = 0 : i64, scratch_operands = 0 : i64, tpu.core_type = #tpu.core_type<tc>, window_params = [{transform_indices = @transform_0, window_bounds = array<i64: 2, 8, 128>}, {pipeline_mode = #tpu.pipeline_mode<synchronous>, transform_indices = @transform_1, window_bounds = array<i64: 2, 128>}, {pipeline_mode = #tpu.pipeline_mode<synchronous>, transform_indices = @transform_2, window_bounds = array<i64: 128, 128>}, {pipeline_mode = #tpu.pipeline_mode<synchronous>, transform_indices = @transform_3, window_bounds = array<i64: 128, 128>}, {transform_indices = @transform_4, window_bounds = array<i64: 2, 8, 128>}]} {
    %c0 = arith.constant 0 : index
    %c0_0 = arith.constant 0 : index
    %c0_1 = arith.constant 0 : index
    %0 = vector.load %arg1[%c0, %c0_0, %c0_1] : memref<2x8x128xf32, #tpu.memory_space<vmem>>, vector<2x8x128xf32>
    %c0_2 = arith.constant 0 : index
    %c0_3 = arith.constant 0 : index
    %1 = vector.load %arg2[%c0_2, %c0_3] : memref<2x128xf32, #tpu.memory_space<vmem>>, vector<1x128xf32>
    %c1 = arith.constant 1 : index
    %c0_4 = arith.constant 0 : index
    %2 = vector.load %arg2[%c1, %c0_4] : memref<2x128xf32, #tpu.memory_space<vmem>>, vector<1x128xf32>
    %cst = arith.constant dense<0.000000e+00> : vector<2x128xf32>
    %3 = vector.multi_reduction <add>, %0, %cst [1] : vector<2x8x128xf32> to vector<2x128xf32>
    %4 = vector.shape_cast %3 : vector<2x128xf32> to vector<2x1x128xf32>
    %cst_5 = arith.constant 8.000000e+00 : f32
    %5 = vector.broadcast %cst_5 : f32 to vector<2x1x128xf32>
    %6 = arith.divf %4, %5 : vector<2x1x128xf32>
    %7 = vector.broadcast %6 : vector<2x1x128xf32> to vector<2x8x128xf32>
    %8 = arith.subf %0, %7 : vector<2x8x128xf32>
    %9 = arith.mulf %8, %8 : vector<2x8x128xf32>
    %cst_6 = arith.constant dense<0.000000e+00> : vector<2x128xf32>
    %10 = vector.multi_reduction <add>, %9, %cst_6 [1] : vector<2x8x128xf32> to vector<2x128xf32>
    %11 = vector.shape_cast %10 : vector<2x128xf32> to vector<2x1x128xf32>
    %cst_7 = arith.constant 8.000000e+00 : f32
    %12 = vector.broadcast %cst_7 : f32 to vector<2x1x128xf32>
    %13 = arith.divf %11, %12 : vector<2x1x128xf32>
    %cst_8 = arith.constant 9.99999974E-6 : f32
    %14 = vector.broadcast %cst_8 : f32 to vector<2x1x128xf32>
    %15 = arith.addf %13, %14 : vector<2x1x128xf32>
    %16 = math.rsqrt %15 : vector<2x1x128xf32>
    %17 = vector.broadcast %16 : vector<2x1x128xf32> to vector<2x8x128xf32>
    %18 = arith.mulf %8, %17 : vector<2x8x128xf32>
    %19 = vector.shape_cast %0 : vector<2x8x128xf32> to vector<16x128xf32>
    %20 = vector.shape_cast %18 : vector<2x8x128xf32> to vector<16x128xf32>
    %c0_9 = arith.constant 0 : index
    %c0_10 = arith.constant 0 : index
    %21 = vector.load %arg3[%c0_9, %c0_10] : memref<128x128xf32, #tpu.memory_space<vmem>>, vector<128x128xf32>
    %cst_11 = arith.constant dense<0.000000e+00> : vector<16x128xf32>
    %22 = tpu.matmul %20, %21, %cst_11 {dimension_numbers = #tpu.dot_dimension_numbers<[1], [0], [0], [1], [0, 0, 1, 1], [], []>, precision = #tpu.contract_precision<fp32>} : vector<16x128xf32>, vector<128x128xf32>, vector<16x128xf32> -> vector<16x128xf32>
    %23 = vector.broadcast %1 : vector<1x128xf32> to vector<16x128xf32>
    %24 = arith.addf %22, %23 : vector<16x128xf32>
    %25 = arith.addf %19, %24 : vector<16x128xf32>
    %c0_12 = arith.constant 0 : index
    %c0_13 = arith.constant 0 : index
    %26 = vector.load %arg4[%c0_12, %c0_13] : memref<128x128xf32, #tpu.memory_space<vmem>>, vector<128x128xf32>
    %cst_14 = arith.constant dense<0.000000e+00> : vector<16x128xf32>
    %27 = tpu.matmul %25, %26, %cst_14 {dimension_numbers = #tpu.dot_dimension_numbers<[1], [0], [0], [1], [0, 0, 1, 1], [], []>, precision = #tpu.contract_precision<fp32>} : vector<16x128xf32>, vector<128x128xf32>, vector<16x128xf32> -> vector<16x128xf32>
    %28 = vector.broadcast %2 : vector<1x128xf32> to vector<16x128xf32>
    %29 = arith.addf %27, %28 : vector<16x128xf32>
    %30 = arith.negf %29 : vector<16x128xf32>
    %31 = math.exp %30 : vector<16x128xf32>
    %cst_15 = arith.constant 1.000000e+00 : f32
    %32 = vector.broadcast %cst_15 : f32 to vector<16x128xf32>
    %33 = arith.addf %32, %31 : vector<16x128xf32>
    %34 = arith.divf %32, %33 : vector<16x128xf32>
    %35 = arith.mulf %25, %34 : vector<16x128xf32>
    %36 = vector.shape_cast %35 : vector<16x128xf32> to vector<2x8x128xf32>
    %c0_16 = arith.constant 0 : index
    %c0_17 = arith.constant 0 : index
    %c0_18 = arith.constant 0 : index
    %37 = vector.load %arg5[%c0_16, %c0_17, %c0_18] : memref<2x8x128xf32, #tpu.memory_space<vmem>>, vector<2x8x128xf32>
    tpu.vector_store %arg5[%c0_16, %c0_17, %c0_18], %36 {strides = array<i32>} : memref<2x8x128xf32, #tpu.memory_space<vmem>>, vector<2x8x128xf32>,
    return
  }
  func.func @transform_0(%arg0: i32) -> (i32, i32, i32) {
    %c0_i32 = arith.constant 0 : i32
    %c0_i32_0 = arith.constant 0 : i32
    %c0_i32_1 = arith.constant 0 : i32
    return %arg0, %c0_i32, %c0_i32_0 : i32, i32, i32
  }
  func.func @transform_1(%arg0: i32) -> (i32, i32) {
    %c0_i32 = arith.constant 0 : i32
    %c0_i32_0 = arith.constant 0 : i32
    %c0_i32_1 = arith.constant 0 : i32
    return %c0_i32, %c0_i32_0 : i32, i32
  }
  func.func @transform_2(%arg0: i32) -> (i32, i32) {
    %c0_i32 = arith.constant 0 : i32
    %c0_i32_0 = arith.constant 0 : i32
    %c0_i32_1 = arith.constant 0 : i32
    return %c0_i32, %c0_i32_0 : i32, i32
  }
  func.func @transform_3(%arg0: i32) -> (i32, i32) {
    %c0_i32 = arith.constant 0 : i32
    %c0_i32_0 = arith.constant 0 : i32
    %c0_i32_1 = arith.constant 0 : i32
    return %c0_i32, %c0_i32_0 : i32, i32
  }
  func.func @transform_4(%arg0: i32) -> (i32, i32, i32) {
    %c0_i32 = arith.constant 0 : i32
    %c0_i32_0 = arith.constant 0 : i32
    %c0_i32_1 = arith.constant 0 : i32
    return %arg0, %c0_i32, %c0_i32_0 : i32, i32, i32
  }
}

</mosaic_0001>

<bundles_post_ra>
// kernel: tpu_custom_call.1
= control target key start
LH: loop header
LB: loop body
LE: loop exit
PB: predicated region body
PF: predicated region fallthrough
CT: control target
= control target key end

     0   :  { %9 = vsyncpa [#allocation3], 0  ;;  %s3496_s0 = inlined_call_operand.hbm [shape: f32[2,8,128], index: 0, kind: input, shape index: {}]   ;;  %s3497_s1 = inlined_call_operand.vmem [shape: f32[2,128], index: 1, kind: input, shape index: {}]   ;;  %s3498_s2 = inlined_call_operand.hbm [shape: f32[128,128], index: 2, kind: input, shape index: {}]   ;;  %s3499_s3 = inlined_call_operand.hbm [shape: f32[128,128], index: 3, kind: input, shape index: {}]   ;;  %s3500_s4 = inlined_call_operand.hbm [shape: f32[2,8,128], index: 4, kind: output, shape index: {}]  }
   0x1   :  { %10 = vsyncpa [#allocation6], 0 }
   0x2   :  { %11 = vsyncpa [#allocation4], 0  ;;  %s2706_s15 = smov [#allocation5]   ;;  %s2707_s17 = smov [#allocation2]  }
   0x3   :  { %s31_s16 = sshll.u32 %s2706_s15, 4  ;;  %s17_s18 = sshll.u32 %s2707_s17, 4  ;;  %s32_s16 = int_to_ptr.vmem [resolvable:$true] %s31_s16  ;;  %s2737_s18 = int_to_ptr.vmem [resolvable:$true] %s17_s18 }
   0x4   :  { %s2612_s21 = scalar_lea.hbm %s3498_s2, 2048 }
   0x5   :  { %p2613_p0 = scmp.ne.s32.totalorder %s3498_s2, %s2612_s21  ;;  %p2616_p1 = scmp.lt.u32.totalorder %s2612_s21, %s3498_s2 }
   0x7   :  { %p2618_p2 = pnand %p2616_p1, %p2613_p0 }
   0x9   :  { %2621 = shalt.err (!%p2618_p2)
}
   0xa   :  { %s2622_s26 = scalar_lea.vmem %s32_s16, 2048  ;;  %p2627_p4 = scmp.lt.s32.totalorder %s32_s16, %s32_s16 }
   0xb   :  { %p2623_p3 = scmp.ne.s32.totalorder %s32_s16, %s2622_s26  ;;  %p2628_p5 = scmp.lt.s32.totalorder %s2622_s26, %s2622_s26 }
   0xd   :  { %p2629_p6 = por %p2628_p5, %p2627_p4 }
   0xf   :  { %p2630_p7 = pnand %p2629_p6, %p2623_p3 }
  0x11   :  { %2633 = shalt.err (!%p2630_p7)
}
  0x12   :  { %s2708_s27 = smov 128   ;;  %s2709_s28 = smov 8  }
  0x13   :  { %37 = dma.hbm_to_vmem [thread:$0]  %s3498_s2, 2048, %s32_s16, [#allocation6], %s2708_s27, %s2708_s27, %s2709_s28  }
  0x14   :  { %s2634_s7 = scalar_lea.hbm %s3496_s0, 256 }
  0x15   :  { %p2635_p8 = scmp.ne.s32.totalorder %s3496_s0, %s2634_s7  ;;  %p2638_p9 = scmp.lt.u32.totalorder %s2634_s7, %s3496_s0 }
  0x17   :  { %p2640_p10 = pnand %p2638_p9, %p2635_p8 }
  0x19   :  { %2643 = shalt.err (!%p2640_p10)
}
  0x1a   :  { %s2644_s12 = scalar_lea.vmem %s2737_s18, 256  ;;  %p2649_p12 = scmp.lt.s32.totalorder %s2737_s18, %s2737_s18 }
  0x1b   :  { %p2645_p11 = scmp.ne.s32.totalorder %s2737_s18, %s2644_s12  ;;  %p2650_p13 = scmp.lt.s32.totalorder %s2644_s12, %s2644_s12 }
  0x1d   :  { %p2651_p0 = por %p2650_p13, %p2649_p12 }
  0x1f   :  { %p2652_p1 = pnand %p2651_p0, %p2645_p11 }
  0x21   :  { %2655 = shalt.err (!%p2652_p1)
}
  0x22   :  { %23 = dma.hbm_to_vmem [thread:$0]  %s3496_s0, 256, %s2737_s18, [#allocation3], %s2708_s27, %s2708_s27, %s2709_s28  }
  0x23   :  { %s2710_s14 = smov [#allocation7]   ;;  %s2656_s19 = scalar_lea.hbm %s3499_s3, 2048 }
  0x24   :  { %s43_s15 = sshll.u32 %s2710_s14, 4  ;;  %p2657_p2 = scmp.ne.s32.totalorder %s3499_s3, %s2656_s19  ;;  %s44_s15 = int_to_ptr.vmem [resolvable:$true] %s43_s15 }
  0x25   :  { %p2660_p3 = scmp.lt.u32.totalorder %s2656_s19, %s3499_s3 }
  0x27   :  { %p2662_p4 = pnand %p2660_p3, %p2657_p2 }
  0x29   :  { %2665 = shalt.err (!%p2662_p4)
}
  0x2a   :  { %s2666_s24 = scalar_lea.vmem %s44_s15, 2048  ;;  %p2671_p6 = scmp.lt.s32.totalorder %s44_s15, %s44_s15 }
  0x2b   :  { %p2667_p5 = scmp.ne.s32.totalorder %s44_s15, %s2666_s24  ;;  %p2672_p7 = scmp.lt.s32.totalorder %s2666_s24, %s2666_s24 }
  0x2d   :  { %p2673_p8 = por %p2672_p7, %p2671_p6 }
  0x2f   :  { %p2674_p9 = pnand %p2673_p8, %p2667_p5 }
  0x31   :  { %2677 = shalt.err (!%p2674_p9)
}
  0x32   :  { %49 = dma.hbm_to_vmem [thread:$0]  %s3499_s3, 2048, %s44_s15, [#allocation6], %s2708_s27, %s2708_s27, %s2709_s28  }
  0x33   :  { %2700 = dma.done.wait [#allocation3], 256  }
  0x34   :  { %2701 = vsyncadd [#allocation3], 4294967040 }
  0x35   :  { %2702 = dma.done.wait [#allocation6], 4096  }
  0x36   :  { %2703 = vsyncadd [#allocation6], 4294963200  ;;  %v102_v0 = vld [vmem:[#allocation5] sm:$0xff]  ;;  %v103_v1 = vld [vmem:[#allocation5 + $0x8] sm:$0xff]  ;;  %s2711_s30 = smov [#allocation8]  }
  0x37   :  { %v2789_v2 = vld [vmem:[#allocation5 + $0x10] sm:$0xff]  ;;  %v123_v3 = vand.u32 4294901760, %v102_v0  ;;  %v126_v4 = vand.u32 4294901760, %v103_v1  ;;  %v2791_v5 = vld [vmem:[#allocation5 + $0x18] sm:$0xff]  ;;  %v2794_v7 = vld [vmem:[#allocation5 + $0x20] sm:$0xff]  ;;  %s1533_s5 = sshll.u32 %s2711_s30, 4  ;;  %s1534_s5 = int_to_ptr.vmem [resolvable:$true] %s1533_s5 }
  0x38   :  { %v129_v6 = vand.u32 4294901760, %v2789_v2  ;;  %v2796_v8 = vld [vmem:[#allocation5 + $0x28] sm:$0xff]  ;;  %v132_v9 = vand.u32 4294901760, %v2791_v5  ;;  %v135_v11 = vand.u32 4294901760, %v2794_v7  ;;  %v2809_v14 = vld [vmem:[#allocation5 + $0x30] sm:$0xff]  ;;  %v2811_v15 = vld [vmem:[#allocation5 + $0x38] sm:$0xff]  ;;  %p2683_p11 = scmp.lt.s32.totalorder %s1534_s5, %s1534_s5 }
  0x39   :  { %v2799_v10 = vpack.c.bf16 %v126_v4, %v123_v3  ;;  %v138_v12 = vand.u32 4294901760, %v2796_v8  ;;  %v2814_v16 = vld [vmem:[#allocation2] sm:$0xff]  ;;  %v2816_v17 = vld [vmem:[#allocation2 + $0x8] sm:$0xff]  ;;  %v141_v20 = vand.u32 4294901760, %v2809_v14  ;;  %v144_v21 = vand.u32 4294901760, %v2811_v15  ;;  %v2829_v22 = vld [vmem:[#allocation5 + $0x40] sm:$0xff] }
  0x3a   :  { %v2807_v13 = vpack.c.bf16 %v132_v9, %v129_v6  ;;  %3510 = vst [vmem:[#allocation12_spill] sm:$0xff] %v2814_v16  ;;  %v63_v18 = vrot.slane %v2814_v16, 4  ;;  %v2831_v23 = vld [vmem:[#allocation5 + $0x48] sm:$0xff]  ;;  %v69_v25 = vrot.slane %v2816_v17, 4  ;;  %v147_v29 = vand.u32 4294901760, %v2829_v22  ;;  %v2846_v31 = vld [vmem:[#allocation5 + $0x50] sm:$0xff] }
  0x3b   :  { %2187 = vmatprep.subr.bf16.mxu0 %v2799_v10  ;;  %v2825_v19 = vpack.c.bf16 %v138_v12, %v135_v11  ;;  %v2842_v28 = vpack.c.bf16 %v144_v21, %v141_v20  ;;  %v150_v30 = vand.u32 4294901760, %v2831_v23  ;;  %v2848_v32 = vld [vmem:[#allocation5 + $0x58] sm:$0xff]  ;;  %v153_v35 = vand.u32 4294901760, %v2846_v31  ;;  %v2860_v40 = vld [vmem:[#allocation5 + $0x60] sm:$0xff]  ;;  %v2862_v43 = vld [vmem:[#allocation5 + $0x68] sm:$0xff] }
  0x3c   :  { %2189 = vmatpush3.bf16.msra.mxu0 %v2799_v10  ;;  %v64_v24 = vadd.f32 %v63_v18, %v2814_v16  ;;  %v70_v27 = vadd.f32 %v69_v25, %v2816_v17  ;;  %v156_v39 = vand.u32 4294901760, %v2848_v32  ;;  %v225_v41 = vsub.f32 %v102_v0, %v123_v3  ;;  %v2874_v51 = vld [vmem:[#allocation5 + $0x70] sm:$0xff]  ;;  %v2876_v52 = vld [vmem:[#allocation5 + $0x78] sm:$0xff] }
  0x3d   :  { %2191 = vmatprep.subr.bf16.mxu0 %v2807_v13  ;;  %v2857_v38 = vpack.c.bf16 %v150_v30, %v147_v29  ;;  %v232_v42 = vsub.f32 %v103_v1, %v126_v4  ;;  %v159_v46 = vand.u32 4294901760, %v2860_v40  ;;  %v162_v50 = vand.u32 4294901760, %v2862_v43 }
  0x3e   :  { %v65_v26 = vrot.slane %v64_v24, 2  ;;  %v71_v34 = vrot.slane %v70_v27, 2  ;;  %v2871_v49 = vpack.c.bf16 %v156_v39, %v153_v35  ;;  %v226_v53 = vand.u32 4294901760, %v225_v41 }
  0x3f   :  { %v233_v54 = vand.u32 4294901760, %v232_v42  ;;  %v165_v57 = vand.u32 4294901760, %v2874_v51  ;;  %v168_v58 = vand.u32 4294901760, %v2876_v52  ;;  %v2894_v61 = vpack.c.bf16 %v162_v50, %v159_v46 }
  0x40   :  { %2193 = vmatpush3.bf16.msra.mxu0 %v2807_v13  ;;  %v66_v33 = vadd.f32 %v65_v26, %v64_v24  ;;  %v72_v37 = vadd.f32 %v71_v34, %v70_v27  ;;  %v227_v62 = vsub.f32 %v225_v41, %v226_v53  ;;  %v2909_v26 = vsub.f32 %v2789_v2, %v129_v6 }
  0x41   :  { %2195 = vmatprep.subr.bf16.mxu0 %v2825_v19  ;;  %v234_v63 = vsub.f32 %v232_v42, %v233_v54  ;;  %v2903_v3 = vpack.c.bf16 %v168_v58, %v165_v57  ;;  %v2911_v27 = vpack.c.bf16 %v232_v42, %v225_v41  ;;  %v2926_v6 = vsub.f32 %v2794_v7, %v135_v11 }
  0x42   :  { %v67_v36 = vrot.slane %v66_v33, 1  ;;  %v73_v45 = vrot.slane %v72_v37, 1  ;;  %v228_v24 = vand.u32 4294901760, %v227_v62  ;;  %v240_v2 = vand.u32 4294901760, %v2909_v26 }
  0x43   :  { %v235_v25 = vand.u32 4294901760, %v234_v63  ;;  %v254_v7 = vand.u32 4294901760, %v2926_v6  ;;  %v2944_v11 = vsub.f32 %v2809_v14, %v141_v20  ;;  %v2958_v14 = vsub.f32 %v2829_v22, %v147_v29 }
  0x44   :  { %2197 = vmatpush3.bf16.msra.mxu0 %v2825_v19  ;;  %v68_v44 = vadd.f32 %v67_v36, %v66_v33  ;;  %v74_v48 = vadd.f32 %v73_v45, %v72_v37  ;;  %v2916_v36 = vsub.f32 %v2791_v5, %v132_v9  ;;  %v2932_v9 = vsub.f32 %v2796_v8, %v138_v12 }
  0x45   :  { %2199 = vmatprep.subr.bf16.mxu0 %v2842_v28  ;;  %v2920_v45 = vpack.c.bf16 %v235_v25, %v228_v24  ;;  %v2973_v22 = vsub.f32 %v2846_v31, %v153_v35  ;;  %v2978_v29 = vsub.f32 %v2848_v32, %v156_v39  ;;  %v2992_v31 = vsub.f32 %v2862_v43, %v162_v50 }
  0x46   :  { %v76_v47 = vmul.f32 0.125, %v68_v44  ;;  %v77_v56 = vmul.f32 0.125, %v74_v48  ;;  %v247_v5 = vand.u32 4294901760, %v2916_v36  ;;  %v261_v12 = vand.u32 4294901760, %v2932_v9 }
  0x47   :  { %v3007_v43 = vsub.f32 %v2876_v52, %v168_v58 }
  0x48   :  { %2201 = vmatpush3.bf16.msra.mxu0 %v2842_v28  ;;  %v2879_v55 = vsub.f32 %v2814_v16, %v76_v47  ;;  %v2887_v60 = vsub.f32 %v2816_v17, %v77_v56  ;;  %v2935_v56 = vpack.c.bf16 %v233_v54, %v226_v53  ;;  %v2950_v53 = vsub.f32 %v2811_v15, %v144_v21 }
  0x49   :  { %2203 = vmatprep.subr.bf16.mxu0 %v2857_v38  ;;  %v2964_v15 = vsub.f32 %v2831_v23, %v150_v30  ;;  %v296_v23 = vand.u32 4294901760, %v2973_v22  ;;  %v303_v30 = vand.u32 4294901760, %v2978_v29  ;;  %v331_v52 = vand.u32 4294901760, %v3007_v43 }
  0x4a   :  { %v80_v59 = vmul.f32 %v2879_v55, %v2879_v55  ;;  %v81_v1 = vmul.f32 %v2887_v60, %v2887_v60 }
  0x4b   :  { %v289_v24 = vand.u32 4294901760, %v2964_v15 }
  0x4c   :  { %2205 = vmatpush3.bf16.msra.mxu0 %v2857_v38  ;;  %v82_v0 = vrot.slane %v80_v59, 4  ;;  %v88_v18 = vrot.slane %v81_v1, 4 }
  0x4d   :  { %2207 = vmatprep.subr.bf16.mxu0 %v2871_v49 }
  0x4e   :  { %v83_v4 = vadd.f32 %v82_v0, %v80_v59  ;;  %v89_v34 = vadd.f32 %v88_v18, %v81_v1  ;;  %v2937_v59 = vpack.c.bf16 %v247_v5, %v240_v2  ;;  %v2952_v0 = vpack.c.bf16 %v261_v12, %v254_v7 }
  0x4f   :  { %v268_v1 = vand.u32 4294901760, %v2944_v11  ;;  %v282_v18 = vand.u32 4294901760, %v2958_v14 }
  0x50   :  { %2209 = vmatpush3.bf16.msra.mxu0 %v2871_v49  ;;  %v84_v33 = vrot.slane %v83_v4, 2  ;;  %v90_v44 = vrot.slane %v89_v34, 2 }
  0x51   :  { %2211 = vmatprep.subr.bf16.mxu0 %v2894_v61  ;;  %v2980_v25 = vpack.c.bf16 %v289_v24, %v282_v18 }
  0x52   :  { %v85_v37 = vadd.f32 %v84_v33, %v83_v4  ;;  %v91_v42 = vadd.f32 %v90_v44, %v89_v34  ;;  %v275_v4 = vand.u32 4294901760, %v2950_v53  ;;  %v2987_v33 = vsub.f32 %v2860_v40, %v159_v46 }
  0x53   :  { %v2994_v34 = vpack.c.bf16 %v303_v30, %v296_v23  ;;  %v317_v44 = vand.u32 4294901760, %v2992_v31  ;;  %v3002_v40 = vsub.f32 %v2874_v51, %v165_v57  ;;  %v248_v51 = vsub.f32 %v2916_v36, %v247_v5 }
  0x54   :  { %2213 = vmatpush3.bf16.msra.mxu0 %v2894_v61  ;;  %v86_v41 = vrot.slane %v85_v37, 1  ;;  %v92_v48 = vrot.slane %v91_v42, 1  ;;  %v2966_v21 = vpack.c.bf16 %v275_v4, %v268_v1  ;;  %v276_v16 = vsub.f32 %v2950_v53, %v275_v4 }
  0x55   :  { %2215 = vmatprep.subr.bf16.mxu0 %v2903_v3  ;;  %v324_v57 = vand.u32 4294901760, %v3002_v40 }
  0x56   :  { %v87_v47 = vadd.f32 %v86_v41, %v85_v37  ;;  %v93_v8 = vadd.f32 %v92_v48, %v91_v42  ;;  %v310_v37 = vand.u32 4294901760, %v2987_v33 }
  0x58   :  { %2217 = vmatpush3.bf16.msra.mxu0 %v2903_v3  ;;  %v94_v62 = vmul.f32 0.125, %v87_v47  ;;  %v95_v63 = vmul.f32 0.125, %v93_v8  ;;  %v241_v47 = vsub.f32 %v2909_v26, %v240_v2  ;;  %v3029_v8 = vpack.c.bf16 %v331_v52, %v324_v57 }
  0x59   :  { %2219 = vmatprep.subr.bf16.mxu0 %v2920_v45 }
  0x5a   :  { %v96_v54 = vadd.f32 1e-05, %v94_v62  ;;  %v97_v20 = vadd.f32 1e-05, %v95_v63  ;;  %v262_v62 = vsub.f32 %v2932_v9, %v261_v12  ;;  %v249_v63 = vand.u32 4294901760, %v248_v51 }
  0x5b   :  { %v277_v51 = vand.u32 4294901760, %v276_v16  ;;  %v311_v16 = vsub.f32 %v2987_v33, %v310_v37 }
  0x5c   :  { %2600 = vrsqrt.f32 %v96_v54  ;;  %v242_v54 = vand.u32 4294901760, %v241_v47 }
  0x5d   :  { %2602 = vrsqrt.f32 %v97_v20 }
  0x5e   :  { %v2222_v12 = vpack.c.bf16 %v249_v63, %v242_v54 }
  0x66   :  { %v2601_v35 = vpop.eup %2600 }
  0x67   :  { %v100_v32 = vmul.f32 %v2601_v35, %v2879_v55  ;;  %v2603_v39 = vpop.eup %2602  ;;  %v3012_v55 = vpack.c.bf16 %v317_v44, %v310_v37  ;;  %v2254_v37 = vpack.c.bf16 %v2916_v36, %v2909_v26  ;;  %v3067_v36 = vld [vmem:[#allocation7 + $0x20] sm:$0xff] }
  0x68   :  { %v101_v50 = vmul.f32 %v2603_v39, %v2887_v60  ;;  %v255_v60 = vsub.f32 %v2926_v6, %v254_v7  ;;  %v263_v39 = vand.u32 4294901760, %v262_v62  ;;  %v297_v62 = vsub.f32 %v2973_v22, %v296_v23 }
  0x69   :  { %v3009_v46 = vand.u32 4294901760, %v100_v32 }
  0x6a   :  { %v3017_v42 = vand.u32 4294901760, %v101_v50 }
  0x6b   :  { %v3015_v41 = vsub.f32 %v100_v32, %v3009_v46  ;;  %v256_v32 = vand.u32 4294901760, %v255_v60  ;;  %v290_v60 = vsub.f32 %v2964_v15, %v289_v24 }
  0x6c   :  { %v3025_v48 = vsub.f32 %v101_v50, %v3017_v42  ;;  %v269_v50 = vsub.f32 %v2944_v11, %v268_v1  ;;  %v304_v1 = vsub.f32 %v2978_v29, %v303_v30  ;;  %v325_v30 = vsub.f32 %v3002_v40, %v324_v57  ;;  %v3056_v57 = vld [vmem:[#allocation7 + $0x8] sm:$0xff] }
  0x6d   :  { %v3502_v58 = vand.u32 4294901760, %v3015_v41  ;;  %v291_v63 = vand.u32 4294901760, %v290_v60  ;;  %v3069_v60 = vld [vmem:[#allocation7 + $0x28] sm:$0xff] }
  0x6e   :  { %v215_v5 = vand.u32 4294901760, %v3025_v48  ;;  %v270_v47 = vand.u32 4294901760, %v269_v50 }
  0x6f   :  { %v206_v2 = vsub.f32 %v3015_v41, %v3502_v58  ;;  %v2226_v58 = vpack.c.bf16 %v263_v39, %v256_v32  ;;  %v312_v32 = vand.u32 4294901760, %v311_v16  ;;  %v332_v39 = vsub.f32 %v3007_v43, %v331_v52  ;;  %v3058_v52 = vld [vmem:[#allocation7 + $0x10] sm:$0xff] }
  0x70   :  { %v216_v35 = vsub.f32 %v3025_v48, %v215_v5  ;;  %v2230_v4 = vpack.c.bf16 %v277_v51, %v270_v47  ;;  %v832_v51 = vand.u32 4294901760, %v3056_v57  ;;  %v835_v26 = vand.u32 4294901760, %v3058_v52 }
  0x71   :  { %v207_v20 = vand.u32 4294901760, %v206_v2  ;;  %v283_v2 = vsub.f32 %v2958_v14, %v282_v18  ;;  %v318_v18 = vsub.f32 %v2992_v31, %v317_v44  ;;  %v3054_v44 = vld [vmem:[#allocation7] sm:$0xff] }
  0x72   :  { %v217_v7 = vand.u32 4294901760, %v216_v35  ;;  %v829_v47 = vand.u32 4294901760, %v3054_v44 }
  0x73   :  { %1798 = vmatprep.mubr.f32.mxu0 %v207_v20  ;;  %v284_v54 = vand.u32 4294901760, %v283_v2  ;;  %v305_v20 = vand.u32 4294901760, %v304_v1  ;;  %v319_v23 = vand.u32 4294901760, %v318_v18  ;;  %v3064_v2 = vld [vmem:[#allocation7 + $0x18] sm:$0xff]  ;;  %v2266_v18 = vpack.c.bf16 %v2964_v15, %v2958_v14 }
  0x74   :  { %1799 = vmatmul.mubr.f32.vlgmr.msra.gmra.mrb[0].mxu0 %v217_v7  ;;  %v326_v7 = vand.u32 4294901760, %v325_v30  ;;  %v3078_v1 = vpack.c.bf16 %v832_v51, %v829_v47  ;;  %v2274_v14 = vpack.c.bf16 %v2992_v31, %v2987_v33  ;;  %v2278_v15 = vpack.c.bf16 %v3007_v43, %v3002_v40  ;;  %v822_v40 = vld [vmem:[#allocation7 + $0x70] sm:$0xff]  ;;  %v823_v43 = vld [vmem:[#allocation7 + $0x78] sm:$0xff] }
  0x75   :  { %2221 = vmatpush3.bf16.msra.mxu0 %v2920_v45  ;;  %1833 = vmatprep.mubr.f32.mxu0 %v3009_v46  ;;  %v298_v45 = vand.u32 4294901760, %v297_v62  ;;  %v2234_v35 = vpack.c.bf16 %v291_v63, %v284_v54  ;;  %v2258_v62 = vpack.c.bf16 %v2932_v9, %v2926_v6  ;;  %v844_v54 = vand.u32 4294901760, %v3069_v60  ;;  %v3090_v6 = vld [vmem:[#allocation7 + $0x38] sm:$0xff] }
  0x76   :  { %2223 = vmatprep.subr.bf16.mxu0 %v2222_v12  ;;  %2379 = vmatprep.subr.bf16.mxu1 %v3078_v1  ;;  %v2262_v9 = vpack.c.bf16 %v2950_v53, %v2944_v11  ;;  %v850_v16 = vand.u32 4294901760, %v3090_v6  ;;  %v2270_v53 = vpack.c.bf16 %v2978_v29, %v2973_v22  ;;  %v3511_v22 = vand.u32 4294901760, %v3015_v41 }
  0x77   :  { %v2238_v24 = vpack.c.bf16 %v305_v20, %v298_v45  ;;  %v3088_v45 = vld [vmem:[#allocation7 + $0x30] sm:$0xff]  ;;  %2381 = vmatpush3.bf16.msra.mxu1 %v3078_v1  ;;  %v3194_v31 = vsub.f32 %v3054_v44, %v829_v47 }
  0x79   :  { %2225 = vmatpush3.bf16.msra.mxu0 %v2222_v12  ;;  %v333_v12 = vand.u32 4294901760, %v332_v39 }
  0x7a   :  { %2227 = vmatprep.subr.bf16.mxu0 %v2226_v58 }
  0x7b   :  { %v2246_v50 = vpack.c.bf16 %v333_v12, %v326_v7 }
  0x7d   :  { %2229 = vmatpush3.bf16.msra.mxu0 %v2226_v58  ;;  %v2242_v58 = vpack.c.bf16 %v319_v23, %v312_v32 }
  0x7e   :  { %2231 = vmatprep.subr.bf16.mxu0 %v2230_v4 }
  0x81   :  { %2233 = vmatpush3.bf16.msra.mxu0 %v2230_v4  ;;  %v841_v4 = vand.u32 4294901760, %v3067_v36 }
  0x82   :  { %2235 = vmatprep.subr.bf16.mxu0 %v2234_v35 }
  0x83   :  { %v3101_v20 = vpack.c.bf16 %v844_v54, %v841_v4 }
  0x85   :  { %2237 = vmatpush3.bf16.msra.mxu0 %v2234_v35  ;;  %v847_v35 = vand.u32 4294901760, %v3088_v45 }
  0x86   :  { %2239 = vmatprep.subr.bf16.mxu0 %v2238_v24 }
  0x87   :  { %v3113_v11 = vpack.c.bf16 %v850_v16, %v847_v35 }
  0x89   :  { %2241 = vmatpush3.bf16.msra.mxu0 %v2238_v24 }
  0x8a   :  { %2243 = vmatprep.subr.bf16.mxu0 %v2242_v58 }
  0x8d   :  { %2245 = vmatpush3.bf16.msra.mxu0 %v2242_v58 }
  0x8e   :  { %2247 = vmatprep.subr.bf16.mxu0 %v2246_v50 }
  0x91   :  { %2249 = vmatpush3.bf16.msra.mxu0 %v2246_v50 }
  0x92   :  { %2251 = vmatprep.subr.bf16.mxu0 %v2911_v27 }
  0x94   :  { %1834 = vmatmul.mubr.f32.vlgmr.msra.gmra.mrb[0].mxu0 %v3017_v42 }
  0x95   :  { %2253 = vmatpush3.bf16.msra.mxu0 %v2911_v27  ;;  %1868 = vmatprep.mubr.f32.mxu0 %v3015_v41  ;;  %v838_v27 = vand.u32 4294901760, %v3064_v2  ;;  %v932_v41 = vand.u32 4294901760, %v3194_v31 }
  0x96   :  { %2255 = vmatprep.subr.bf16.mxu0 %v2254_v37 }
  0x97   :  { %v3086_v63 = vpack.c.bf16 %v838_v27, %v835_v26 }
  0x99   :  { %2257 = vmatpush3.bf16.msra.mxu0 %v2254_v37  ;;  %2383 = vmatprep.subr.bf16.mxu1 %v3086_v63 }
  0x9a   :  { %2259 = vmatprep.subr.bf16.mxu0 %v2258_v62  ;;  %2385 = vmatpush3.bf16.msra.mxu1 %v3086_v63 }
  0x9b   :  { %2387 = vmatprep.subr.bf16.mxu1 %v3101_v20 }
  0x9d   :  { %2261 = vmatpush3.bf16.msra.mxu0 %v2258_v62 }
  0x9e   :  { %2263 = vmatprep.subr.bf16.mxu0 %v2262_v9  ;;  %2389 = vmatpush3.bf16.msra.mxu1 %v3101_v20 }
  0x9f   :  { %2391 = vmatprep.subr.bf16.mxu1 %v3113_v11 }
  0xa1   :  { %2265 = vmatpush3.bf16.msra.mxu0 %v2262_v9 }
  0xa2   :  { %2267 = vmatprep.subr.bf16.mxu0 %v2266_v18  ;;  %2393 = vmatpush3.bf16.msra.mxu1 %v3113_v11 }
  0xa5   :  { %2269 = vmatpush3.bf16.msra.mxu0 %v2266_v18 }
  0xa6   :  { %2271 = vmatprep.subr.bf16.mxu0 %v2270_v53 }
  0xa9   :  { %2273 = vmatpush3.bf16.msra.mxu0 %v2270_v53 }
  0xaa   :  { %2275 = vmatprep.subr.bf16.mxu0 %v2274_v14 }
  0xad   :  { %2277 = vmatpush3.bf16.msra.mxu0 %v2274_v14 }
  0xae   :  { %2279 = vmatprep.subr.bf16.mxu0 %v2278_v15 }
  0xb1   :  { %2281 = vmatpush3.bf16.msra.mxu0 %v2278_v15 }
  0xb2   :  { %2283 = vmatprep.subr.bf16.mxu0 %v2799_v10 }
  0xb4   :  { %1869 = vmatmul.mubr.f32.vlgmr.msra.gmra.mrb[0].mxu0 %v3025_v48 }
  0xb5   :  { %2285 = vmatpush3.bf16.msra.mxu0 %v2799_v10  ;;  %1903 = vmatprep.mubr.f32.mxu0 %v3511_v22 }
  0xb6   :  { %2287 = vmatprep.subr.bf16.mxu0 %v2807_v13 }
  0xb9   :  { %2289 = vmatpush3.bf16.msra.mxu0 %v2807_v13 }
  0xba   :  { %2291 = vmatprep.subr.bf16.mxu0 %v2825_v19 }
  0xbd   :  { %2293 = vmatpush3.bf16.msra.mxu0 %v2825_v19 }
  0xbe   :  { %2295 = vmatprep.subr.bf16.mxu0 %v2842_v28 }
  0xc1   :  { %2297 = vmatpush3.bf16.msra.mxu0 %v2842_v28 }
  0xc2   :  { %2299 = vmatprep.subr.bf16.mxu0 %v2857_v38 }
  0xc5   :  { %2301 = vmatpush3.bf16.msra.mxu0 %v2857_v38 }
  0xc6   :  { %2303 = vmatprep.subr.bf16.mxu0 %v2871_v49 }
  0xc9   :  { %2305 = vmatpush3.bf16.msra.mxu0 %v2871_v49 }
  0xca   :  { %2307 = vmatprep.subr.bf16.mxu0 %v2894_v61 }
  0xcd   :  { %2309 = vmatpush3.bf16.msra.mxu0 %v2894_v61 }
  0xce   :  { %2311 = vmatprep.subr.bf16.mxu0 %v2903_v3 }
  0xd1   :  { %2313 = vmatpush3.bf16.msra.mxu0 %v2903_v3 }
  0xd2   :  { %2315 = vmatprep.subr.bf16.mxu0 %v2935_v56 }
  0xd4   :  { %1904 = vmatmul.mubr.f32.vlgmr.msra.gmra.mrb[0].mxu0 %v215_v5 }
  0xd5   :  { %2317 = vmatpush3.bf16.msra.mxu0 %v2935_v56  ;;  %1938 = vmatprep.mubr.f32.mxu0 %v3009_v46 }
  0xd6   :  { %2319 = vmatprep.subr.bf16.mxu0 %v2937_v59 }
  0xd9   :  { %2321 = vmatpush3.bf16.msra.mxu0 %v2937_v59  ;;  %v819_v59 = vld [vmem:[#allocation7 + $0x58] sm:$0xff] }
  0xda   :  { %2323 = vmatprep.subr.bf16.mxu0 %v2952_v0 }
  0xdd   :  { %2325 = vmatpush3.bf16.msra.mxu0 %v2952_v0  ;;  %v862_v0 = vand.u32 4294901760, %v819_v59 }
  0xde   :  { %2327 = vmatprep.subr.bf16.mxu0 %v2966_v21 }
  0xdf   :  { %v3232_v44 = vsub.f32 %v819_v59, %v862_v0 }
  0xe1   :  { %2329 = vmatpush3.bf16.msra.mxu0 %v2966_v21  ;;  %v820_v21 = vld [vmem:[#allocation7 + $0x60] sm:$0xff]  ;;  %v3507_v62 = vand.u32 4294901760, %v3232_v44 }
  0xe2   :  { %2331 = vmatprep.subr.bf16.mxu0 %v2980_v25  ;;  %v865_v29 = vand.u32 4294901760, %v820_v21 }
  0xe3   :  { %v1010_v53 = vsub.f32 %v3232_v44, %v3507_v62 }
  0xe4   :  { %v3244_v14 = vsub.f32 %v820_v21, %v865_v29 }
  0xe5   :  { %2333 = vmatpush3.bf16.msra.mxu0 %v2980_v25 }
  0xe6   :  { %2335 = vmatprep.subr.bf16.mxu0 %v2994_v34 }
  0xe9   :  { %2337 = vmatpush3.bf16.msra.mxu0 %v2994_v34  ;;  %v3199_v34 = vsub.f32 %v3056_v57, %v832_v51 }
  0xea   :  { %2339 = vmatprep.subr.bf16.mxu0 %v3012_v55 }
  0xed   :  { %2341 = vmatpush3.bf16.msra.mxu0 %v3012_v55  ;;  %v874_v55 = vand.u32 4294901760, %v823_v43 }
  0xee   :  { %2343 = vmatprep.subr.bf16.mxu0 %v3029_v8 }
  0xf1   :  { %2345 = vmatpush3.bf16.msra.mxu0 %v3029_v8  ;;  %v933_v8 = vsub.f32 %v3194_v31, %v932_v41 }
  0xf2   :  { %2347 = vmatprep.subr.bf16.mxu0 %v2799_v10 }
  0xf3   :  { %v934_v24 = vand.u32 4294901760, %v933_v8 }
  0xf4   :  { %1939 = vmatmul.mubr.f32.vlgmr.msra.gmra.mrb[0].mxu0 %v3017_v42 }
  0xf5   :  { %2349 = vmatpush3.bf16.msra.mxu0 %v2799_v10  ;;  %1973 = vmatprep.mubr.f32.mxu0 %v3009_v46  ;;  %v816_v10 = vld [vmem:[#allocation7 + $0x40] sm:$0xff]  ;;  %v871_v46 = vand.u32 4294901760, %v822_v40 }
  0xf6   :  { %2351 = vmatprep.subr.bf16.mxu0 %v2807_v13 }
  0xf7   :  { %v3205_v48 = vpack.c.bf16 %v874_v55, %v871_v46  ;;  %v3255_v59 = vsub.f32 %v822_v40, %v871_v46 }
  0xf9   :  { %2353 = vmatpush3.bf16.msra.mxu0 %v2807_v13  ;;  %v817_v13 = vld [vmem:[#allocation7 + $0x48] sm:$0xff] }
  0xfa   :  { %2355 = vmatprep.subr.bf16.mxu0 %v2825_v19 }
  0xfd   :  { %2357 = vmatpush3.bf16.msra.mxu0 %v2825_v19  ;;  %v853_v19 = vand.u32 4294901760, %v816_v10 }
  0xfe   :  { %2359 = vmatprep.subr.bf16.mxu0 %v2842_v28 }
  0xff   :  { %v3218_v30 = vsub.f32 %v816_v10, %v853_v19  ;;  %v1011_v10 = vand.u32 4294901760, %v1010_v53  ;;  %v3305_v53 = vsub.f32 %v3064_v2, %v838_v27  ;;  %v3320_v2 = vsub.f32 %v3069_v60, %v844_v54 }
 0x101   :  { %2361 = vmatpush3.bf16.msra.mxu0 %v2842_v28  ;;  %v856_v28 = vand.u32 4294901760, %v817_v13  ;;  %v988_v58 = vand.u32 4294901760, %v3218_v30  ;;  %v967_v54 = vand.u32 4294901760, %v3320_v2 }
 0x102   :  { %2363 = vmatprep.subr.bf16.mxu0 %v2857_v38 }
 0x103   :  { %v3181_v56 = vpack.c.bf16 %v856_v28, %v853_v19  ;;  %v3220_v39 = vsub.f32 %v817_v13, %v856_v28  ;;  %v989_v12 = vsub.f32 %v3218_v30, %v988_v58  ;;  %v3506_v13 = vand.u32 4294901760, %v3244_v14 }
 0x105   :  { %2365 = vmatpush3.bf16.msra.mxu0 %v2857_v38  ;;  %v818_v38 = vld [vmem:[#allocation7 + $0x50] sm:$0xff]  ;;  %2395 = vmatprep.subr.bf16.mxu1 %v3181_v56  ;;  %v3509_v7 = vand.u32 4294901760, %v3220_v39  ;;  %v990_v57 = vand.u32 4294901760, %v989_v12 }
 0x106   :  { %2367 = vmatprep.subr.bf16.mxu0 %v2871_v49  ;;  %2397 = vmatpush3.bf16.msra.mxu1 %v3181_v56 }
 0x107   :  { %v996_v50 = vsub.f32 %v3220_v39, %v3509_v7 }
 0x109   :  { %2369 = vmatpush3.bf16.msra.mxu0 %v2871_v49  ;;  %v859_v49 = vand.u32 4294901760, %v818_v38  ;;  %v997_v47 = vand.u32 4294901760, %v996_v50 }
 0x10a   :  { %2371 = vmatprep.subr.bf16.mxu0 %v2894_v61 }
 0x10b   :  { %v3230_v37 = vsub.f32 %v818_v38, %v859_v49  ;;  %v3236_v9 = vpack.c.bf16 %v997_v47, %v990_v57  ;;  %v1017_v38 = vsub.f32 %v3244_v14, %v3506_v13  ;;  %v1546_v47 = vld [vmem:[%s3497_s1] ss:$0 sm:$0xff] }
 0x10d   :  { %2373 = vmatpush3.bf16.msra.mxu0 %v2894_v61  ;;  %v3185_v61 = vpack.c.bf16 %v862_v0, %v859_v49  ;;  %v3508_v51 = vand.u32 4294901760, %v3230_v37  ;;  %v3257_v49 = vsub.f32 %v823_v43, %v874_v55  ;;  %v1018_v21 = vand.u32 4294901760, %v1017_v38 }
 0x10e   :  { %2375 = vmatprep.subr.bf16.mxu0 %v2903_v3  ;;  %v3284_v12 = vpack.c.bf16 %v3232_v44, %v3230_v37 }
 0x10f   :  { %2399 = vmatprep.subr.bf16.mxu1 %v3185_v61  ;;  %v1003_v18 = vsub.f32 %v3230_v37, %v3508_v51  ;;  %v3292_v57 = vpack.c.bf16 %v3257_v49, %v3255_v59 }
 0x110   :  { %2401 = vmatpush3.bf16.msra.mxu1 %v3185_v61 }
 0x111   :  { %2377 = vmatpush3.bf16.msra.mxu0 %v2903_v3  ;;  %v821_v3 = vld [vmem:[#allocation7 + $0x68] sm:$0xff]  ;;  %v1004_v22 = vand.u32 4294901760, %v1003_v18  ;;  %v3300_v18 = vsub.f32 %v3058_v52, %v835_v26  ;;  %v3512_v26 = vld [vmem:[#allocation12_spill] sm:$0xff] }
 0x112   :  { %v868_v25 = vand.u32 4294901760, %v821_v3 }
 0x113   :  { %v3250_v28 = vpack.c.bf16 %v1011_v10, %v1004_v22 }
 0x114   :  { %1974 = vmatmul.mubr.f32.vlgmr.msra.gmra.mrb[0].mxu0 %v3017_v42  ;;  %v3189_v33 = vpack.c.bf16 %v868_v25, %v865_v29  ;;  %v939_v42 = vand.u32 4294901760, %v3199_v34  ;;  %v3246_v15 = vsub.f32 %v821_v3, %v868_v25  ;;  %v3504_v3 = vand.u32 4294901760, %v3255_v59 }
 0x115   :  { %v3503_v29 = vand.u32 4294901760, %v3257_v49 }
 0x116   :  { %2403 = vmatprep.subr.bf16.mxu1 %v3189_v33  ;;  %v940_v5 = vsub.f32 %v3199_v34, %v939_v42  ;;  %v3505_v19 = vand.u32 4294901760, %v3246_v15  ;;  %v1031_v8 = vsub.f32 %v3255_v59, %v3504_v3  ;;  %v3288_v50 = vpack.c.bf16 %v3246_v15, %v3244_v14 }
 0x117   :  { %2405 = vmatpush3.bf16.msra.mxu1 %v3189_v33  ;;  %v1038_v40 = vsub.f32 %v3257_v49, %v3503_v29 }
 0x118   :  { %2407 = vmatprep.subr.bf16.mxu1 %v3205_v48  ;;  %v941_v32 = vand.u32 4294901760, %v940_v5  ;;  %v1024_v0 = vsub.f32 %v3246_v15, %v3505_v19  ;;  %v1032_v46 = vand.u32 4294901760, %v1031_v8  ;;  %v3312_v8 = vsub.f32 %v3067_v36, %v841_v4 }
 0x119   :  { %v1039_v55 = vand.u32 4294901760, %v1038_v40 }
 0x11a   :  { %v3215_v23 = vpack.c.bf16 %v941_v32, %v934_v24  ;;  %v1025_v25 = vand.u32 4294901760, %v1024_v0  ;;  %v3276_v24 = vpack.c.bf16 %v3199_v34, %v3194_v31  ;;  %v3280_v32 = vpack.c.bf16 %v3220_v39, %v3218_v30 }
 0x11b   :  { %2409 = vmatpush3.bf16.msra.mxu1 %v3205_v48  ;;  %v3272_v5 = vpack.c.bf16 %v1039_v55, %v1032_v46  ;;  %v960_v60 = vand.u32 4294901760, %v3312_v8  ;;  %v3346_v55 = vsub.f32 %v3088_v45, %v847_v35  ;;  %v3518_v30 = vand.u32 4294901760, %v3255_v59 }
 0x11c   :  { %2411 = vmatprep.subr.bf16.mxu1 %v3215_v23  ;;  %v3270_v43 = vpack.c.bf16 %v1025_v25, %v1018_v21  ;;  %v946_v21 = vand.u32 4294901760, %v3300_v18  ;;  %v953_v25 = vand.u32 4294901760, %v3305_v53 }
 0x11d   :  { %v961_v45 = vsub.f32 %v3312_v8, %v960_v60  ;;  %v2514_v31 = vpack.c.bf16 %v967_v54, %v960_v60 }
 0x11e   :  { %v947_v36 = vsub.f32 %v3300_v18, %v946_v21 }
 0x11f   :  { %v962_v19 = vand.u32 4294901760, %v961_v45 }
 0x1e7   :  { %v1975_v22 = vpop.f32.mrb[0].mxu0 }
 0x1e8   :  { %v2570_v10 = vadd.f32 %v1975_v22, %v1546_v47  ;;  %v796_v38 = vpop.f32.mrb[1].mxu0 }
 0x1e9   :  { %v2571_v0 = vadd.f32 %v1546_v47, %v796_v38  ;;  %v3351_v47 = vsub.f32 %v3090_v6, %v850_v16  ;;  %v968_v6 = vsub.f32 %v3320_v2, %v967_v54  ;;  %v974_v16 = vand.u32 4294901760, %v3346_v55 }
 0x1ea   :  { %v3315_v52 = vadd.f32 %v2570_v10, %v2816_v17  ;;  %v954_v17 = vsub.f32 %v3305_v53, %v953_v25 }
 0x1eb   :  { %v3323_v27 = vadd.f32 %v2571_v0, %v3512_v26  ;;  %v948_v0 = vand.u32 4294901760, %v947_v36  ;;  %v981_v29 = vand.u32 4294901760, %v3351_v47  ;;  %v969_v62 = vand.u32 4294901760, %v968_v6 }
 0x1ec   :  { %v3326_v40 = vand.u32 4294901760, %v3315_v52  ;;  %v955_v26 = vand.u32 4294901760, %v954_v17  ;;  %v975_v51 = vsub.f32 %v3346_v55, %v974_v16 }
 0x1ed   :  { %v3329_v46 = vand.u32 4294901760, %v3323_v27  ;;  %v982_v7 = vsub.f32 %v3351_v47, %v981_v29  ;;  %v2518_v34 = vpack.c.bf16 %v981_v29, %v974_v16  ;;  %v3517_v29 = vand.u32 4294901760, %v3246_v15 }
 0x1ee   :  { %v3340_v4 = vsub.f32 %v3315_v52, %v3326_v40  ;;  %v2414_v17 = vpack.c.bf16 %v955_v26, %v948_v0  ;;  %v976_v0 = vand.u32 4294901760, %v975_v51  ;;  %v2454_v51 = vpack.c.bf16 %v3351_v47, %v3346_v55 }
 0x1ef   :  { %v3355_v22 = vsub.f32 %v3323_v27, %v3329_v46  ;;  %v983_v26 = vand.u32 4294901760, %v982_v7  ;;  %v2450_v7 = vpack.c.bf16 %v3320_v2, %v3312_v8 }
 0x1f0   :  { %v921_v10 = vand.u32 4294901760, %v3340_v4 }
 0x1f1   :  { %v911_v38 = vand.u32 4294901760, %v3355_v22  ;;  %v2422_v45 = vpack.c.bf16 %v983_v26, %v976_v0 }
 0x1f2   :  { %v922_v35 = vsub.f32 %v3340_v4, %v921_v10 }
 0x1f3   :  { %v912_v3 = vsub.f32 %v3355_v22, %v911_v38 }
 0x1f4   :  { %v923_v13 = vand.u32 4294901760, %v922_v35 }
 0x1f5   :  { %v913_v36 = vand.u32 4294901760, %v912_v3  ;;  %v2418_v3 = vpack.c.bf16 %v969_v62, %v962_v19  ;;  %v2506_v62 = vpack.c.bf16 %v939_v42, %v932_v41  ;;  %v3513_v41 = vand.u32 4294901760, %v3220_v39 }
 0x1f6   :  { %v3515_v19 = vand.u32 4294901760, %v3232_v44  ;;  %v3519_v39 = vand.u32 4294901760, %v3257_v49 }
 0x1f7   :  { %2008 = vmatprep.mubr.f32.mxu1 %v913_v36  ;;  %v2522_v42 = vpack.c.bf16 %v3513_v41, %v988_v58 }
 0x1f8   :  { %2009 = vmatmul.mubr.f32.vlgmr.msra.gmra.mrb[0].mxu1 %v923_v13  ;;  %v3514_v13 = vand.u32 4294901760, %v3230_v37  ;;  %v2534_v58 = vpack.c.bf16 %v3519_v39, %v3518_v30 }
 0x1f9   :  { %2413 = vmatpush3.bf16.msra.mxu1 %v3215_v23  ;;  %2043 = vmatprep.mubr.f32.mxu1 %v3329_v46  ;;  %v2446_v23 = vpack.c.bf16 %v3305_v53, %v3300_v18 }
 0x1fa   :  { %2415 = vmatprep.subr.bf16.mxu1 %v2414_v17 }
 0x1fd   :  { %2417 = vmatpush3.bf16.msra.mxu1 %v2414_v17 }
 0x1fe   :  { %2419 = vmatprep.subr.bf16.mxu1 %v2418_v3 }
 0x201   :  { %2421 = vmatpush3.bf16.msra.mxu1 %v2418_v3 }
 0x202   :  { %2423 = vmatprep.subr.bf16.mxu1 %v2422_v45 }
 0x205   :  { %2425 = vmatpush3.bf16.msra.mxu1 %v2422_v45 }
 0x206   :  { %2427 = vmatprep.subr.bf16.mxu1 %v3236_v9 }
 0x209   :  { %2429 = vmatpush3.bf16.msra.mxu1 %v3236_v9  ;;  %v2510_v9 = vpack.c.bf16 %v953_v25, %v946_v21 }
 0x20a   :  { %2431 = vmatprep.subr.bf16.mxu1 %v3250_v28 }
 0x20d   :  { %2433 = vmatpush3.bf16.msra.mxu1 %v3250_v28  ;;  %v2526_v28 = vpack.c.bf16 %v3515_v19, %v3514_v13 }
 0x20e   :  { %2435 = vmatprep.subr.bf16.mxu1 %v3270_v43 }
 0x211   :  { %2437 = vmatpush3.bf16.msra.mxu1 %v3270_v43  ;;  %v3516_v43 = vand.u32 4294901760, %v3244_v14 }
 0x212   :  { %2439 = vmatprep.subr.bf16.mxu1 %v3272_v5 }
 0x215   :  { %2441 = vmatpush3.bf16.msra.mxu1 %v3272_v5  ;;  %v2530_v5 = vpack.c.bf16 %v3517_v29, %v3516_v43 }
 0x216   :  { %2443 = vmatprep.subr.bf16.mxu1 %v3276_v24 }
 0x218   :  { %2044 = vmatmul.mubr.f32.vlgmr.msra.gmra.mrb[0].mxu1 %v3326_v40 }
 0x219   :  { %2445 = vmatpush3.bf16.msra.mxu1 %v3276_v24  ;;  %2078 = vmatprep.mubr.f32.mxu1 %v3355_v22 }
 0x21a   :  { %2447 = vmatprep.subr.bf16.mxu1 %v2446_v23 }
 0x21d   :  { %2449 = vmatpush3.bf16.msra.mxu1 %v2446_v23 }
 0x21e   :  { %2451 = vmatprep.subr.bf16.mxu1 %v2450_v7 }
 0x221   :  { %2453 = vmatpush3.bf16.msra.mxu1 %v2450_v7 }
 0x222   :  { %2455 = vmatprep.subr.bf16.mxu1 %v2454_v51 }
 0x225   :  { %2457 = vmatpush3.bf16.msra.mxu1 %v2454_v51 }
 0x226   :  { %2459 = vmatprep.subr.bf16.mxu1 %v3280_v32 }
 0x229   :  { %2461 = vmatpush3.bf16.msra.mxu1 %v3280_v32 }
 0x22a   :  { %2463 = vmatprep.subr.bf16.mxu1 %v3284_v12 }
 0x22d   :  { %2465 = vmatpush3.bf16.msra.mxu1 %v3284_v12 }
 0x22e   :  { %2467 = vmatprep.subr.bf16.mxu1 %v3288_v50 }
 0x231   :  { %2469 = vmatpush3.bf16.msra.mxu1 %v3288_v50 }
 0x232   :  { %2471 = vmatprep.subr.bf16.mxu1 %v3292_v57 }
 0x235   :  { %2473 = vmatpush3.bf16.msra.mxu1 %v3292_v57 }
 0x236   :  { %2475 = vmatprep.subr.bf16.mxu1 %v3078_v1 }
 0x238   :  { %2079 = vmatmul.mubr.f32.vlgmr.msra.gmra.mrb[0].mxu1 %v3340_v4 }
 0x239   :  { %2477 = vmatpush3.bf16.msra.mxu1 %v3078_v1  ;;  %2113 = vmatprep.mubr.f32.mxu1 %v911_v38 }
 0x23a   :  { %2479 = vmatprep.subr.bf16.mxu1 %v3086_v63 }
 0x23d   :  { %2481 = vmatpush3.bf16.msra.mxu1 %v3086_v63 }
 0x23e   :  { %2483 = vmatprep.subr.bf16.mxu1 %v3101_v20 }
 0x241   :  { %2485 = vmatpush3.bf16.msra.mxu1 %v3101_v20 }
 0x242   :  { %2487 = vmatprep.subr.bf16.mxu1 %v3113_v11 }
 0x245   :  { %2489 = vmatpush3.bf16.msra.mxu1 %v3113_v11 }
 0x246   :  { %2491 = vmatprep.subr.bf16.mxu1 %v3181_v56 }
 0x249   :  { %2493 = vmatpush3.bf16.msra.mxu1 %v3181_v56 }
 0x24a   :  { %2495 = vmatprep.subr.bf16.mxu1 %v3185_v61 }
 0x24d   :  { %2497 = vmatpush3.bf16.msra.mxu1 %v3185_v61 }
 0x24e   :  { %2499 = vmatprep.subr.bf16.mxu1 %v3189_v33 }
 0x251   :  { %2501 = vmatpush3.bf16.msra.mxu1 %v3189_v33 }
 0x252   :  { %2503 = vmatprep.subr.bf16.mxu1 %v3205_v48 }
 0x255   :  { %2505 = vmatpush3.bf16.msra.mxu1 %v3205_v48 }
 0x256   :  { %2507 = vmatprep.subr.bf16.mxu1 %v2506_v62 }
 0x258   :  { %2114 = vmatmul.mubr.f32.vlgmr.msra.gmra.mrb[0].mxu1 %v921_v10 }
 0x259   :  { %2509 = vmatpush3.bf16.msra.mxu1 %v2506_v62  ;;  %2148 = vmatprep.mubr.f32.mxu1 %v3329_v46 }
 0x25a   :  { %2511 = vmatprep.subr.bf16.mxu1 %v2510_v9 }
 0x25d   :  { %2513 = vmatpush3.bf16.msra.mxu1 %v2510_v9 }
 0x25e   :  { %2515 = vmatprep.subr.bf16.mxu1 %v2514_v31 }
 0x261   :  { %2517 = vmatpush3.bf16.msra.mxu1 %v2514_v31 }
 0x262   :  { %2519 = vmatprep.subr.bf16.mxu1 %v2518_v34 }
 0x265   :  { %2521 = vmatpush3.bf16.msra.mxu1 %v2518_v34 }
 0x266   :  { %2523 = vmatprep.subr.bf16.mxu1 %v2522_v42 }
 0x269   :  { %2525 = vmatpush3.bf16.msra.mxu1 %v2522_v42 }
 0x26a   :  { %2527 = vmatprep.subr.bf16.mxu1 %v2526_v28 }
 0x26d   :  { %2529 = vmatpush3.bf16.msra.mxu1 %v2526_v28 }
 0x26e   :  { %2531 = vmatprep.subr.bf16.mxu1 %v2530_v5 }
 0x271   :  { %2533 = vmatpush3.bf16.msra.mxu1 %v2530_v5 }
 0x272   :  { %2535 = vmatprep.subr.bf16.mxu1 %v2534_v58 }
 0x275   :  { %2537 = vmatpush3.bf16.msra.mxu1 %v2534_v58 }
 0x276   :  { %2539 = vmatprep.subr.bf16.mxu1 %v3078_v1 }
 0x278   :  { %2149 = vmatmul.mubr.f32.vlgmr.msra.gmra.mrb[0].mxu1 %v3326_v40 }
 0x279   :  { %2541 = vmatpush3.bf16.msra.mxu1 %v3078_v1  ;;  %2183 = vmatprep.mubr.f32.mxu1 %v3329_v46  ;;  %v1547_v1 = vld [vmem:[%s3497_s1 + $0x1] ss:$0 sm:$0xff]  ;;  %s2678_s1 = scalar_lea.vmem %s1534_s5, 256 }
 0x27a   :  { %2543 = vmatprep.subr.bf16.mxu1 %v3086_v63  ;;  %p2679_p10 = scmp.ne.s32.totalorder %s1534_s5, %s2678_s1  ;;  %p2684_p12 = scmp.lt.s32.totalorder %s2678_s1, %s2678_s1 }
 0x27c   :  { %p2685_p13 = por %p2684_p12, %p2683_p11 }
 0x27d   :  { %2545 = vmatpush3.bf16.msra.mxu1 %v3086_v63 }
 0x27e   :  { %2547 = vmatprep.subr.bf16.mxu1 %v3101_v20  ;;  %p2686_p0 = pnand %p2685_p13, %p2679_p10 }
 0x281   :  { %2549 = vmatpush3.bf16.msra.mxu1 %v3101_v20 }
 0x282   :  { %2551 = vmatprep.subr.bf16.mxu1 %v3113_v11 }
 0x285   :  { %2553 = vmatpush3.bf16.msra.mxu1 %v3113_v11 }
 0x286   :  { %2555 = vmatprep.subr.bf16.mxu1 %v3181_v56 }
 0x289   :  { %2557 = vmatpush3.bf16.msra.mxu1 %v3181_v56 }
 0x28a   :  { %2559 = vmatprep.subr.bf16.mxu1 %v3185_v61 }
 0x28d   :  { %2561 = vmatpush3.bf16.msra.mxu1 %v3185_v61 }
 0x28e   :  { %2563 = vmatprep.subr.bf16.mxu1 %v3189_v33 }
 0x291   :  { %2565 = vmatpush3.bf16.msra.mxu1 %v3189_v33 }
 0x292   :  { %2567 = vmatprep.subr.bf16.mxu1 %v3205_v48 }
 0x295   :  { %2569 = vmatpush3.bf16.msra.mxu1 %v3205_v48 }
 0x298   :  { %2184 = vmatmul.mubr.f32.vlgmr.msra.gmra.mrb[0].mxu1 %v3326_v40 }
 0x36b   :  { %v2185_v63 = vpop.f32.mrb[0].mxu1 }
 0x36c   :  { %v2572_v20 = vadd.f32 %v2185_v63, %v1547_v1  ;;  %v1502_v11 = vpop.f32.mrb[1].mxu1 }
 0x36d   :  { %v2573_v56 = vadd.f32 %v1547_v1, %v1502_v11 }
 0x36e   :  { %v1549_v37 = vmul.f32 -1.442695, %v2572_v20 }
 0x36f   :  { %v1548_v61 = vmul.f32 -1.442695, %v2573_v56 }
 0x370   :  { %2604 = vpow2.f32 %v1549_v37 }
 0x371   :  { %2606 = vpow2.f32 %v1548_v61 }
 0x37a   :  { %v2605_v44 = vpop.eup %2604 }
 0x37b   :  { %v2607_v33 = vpop.eup %2606  ;;  %v1519_v14 = vadd.f32 1.0, %v2605_v44 }
 0x37c   :  { %v1518_v15 = vadd.f32 1.0, %v2607_v33 }
 0x37d   :  { %2608 = vrcp.f32 %v1519_v14 }
 0x37e   :  { %2610 = vrcp.f32 %v1518_v15 }
 0x387   :  { %v2609_v48 = vpop.eup %2608 }
 0x388   :  { %v2611_v59 = vpop.eup %2610  ;;  %v1525_v49 = vmul.f32 %v2609_v48, %v3315_v52 }
 0x389   :  { %v1524_v24 = vmul.f32 %v2611_v59, %v3323_v27 }
 0x38a   :  { %1527 = vst [vmem:[#allocation8 + $0x8] sm:$0xff] %v1525_v49 }
 0x38b   :  { %1526 = vst [vmem:[#allocation8] sm:$0xff] %v1524_v24 }
 0x38c   :  { %2689 = shalt.err (!%p2686_p0)
}
 0x38d   :  { %s2690_s8 = scalar_lea.hbm %s3500_s4, 256 }
 0x38e   :  { %p2691_p1 = scmp.ne.s32.totalorder %s3500_s4, %s2690_s8  ;;  %p2694_p2 = scmp.lt.u32.totalorder %s2690_s8, %s3500_s4 }
 0x390   :  { %p2696_p3 = pnand %p2694_p2, %p2691_p1 }
 0x392   :  { %2699 = shalt.err (!%p2696_p3)
}
 0x393   :  { %1539 = dma.vmem_to_hbm [thread:$0]  %s1534_s5, 256, %s3500_s4, [#allocation4], %s2708_s27, %s2708_s27, %s2709_s28  }
 0x394   :  { %2704 = dma.done.wait [#allocation4], 256  }
 0x395   :  { %2705 = vsyncadd [#allocation4], 4294967040 }
 0x396   :  { %1543 = vsyncpa [#allocation3], 1 }
 0x397   :  { %1544 = vsyncpa [#allocation6], 1 }
 0x398   :  { %1545 = vsyncpa [#allocation4], 1 }

</bundles_post_ra>
